<compile_context>
chip_gen: v7x
topology: tpu7x:2x2x1
jax: 0.10.0
libtpu: 0.0.40
codegen_flags: <defaults>
</compile_context>

<pallas_src>
import jax
import jax.numpy as jnp
from jax import lax
from jax.experimental import pallas as pl
from jax.experimental.pallas import tpu as pltpu


def _round_up(x: int, m: int) -> int:
    return ((x + m - 1) // m) * m


def energy_samples_loss(x, y, *, tile=None):
    """Pallas-backed equivalent of geomloss.SamplesLoss('energy')(x, y) -> (B,) f32.

    Fused symmetric form with signed uniform weights w = [+1/N, -1/M, 0 (pad)]:
        L = -0.5 * sum_{p,q} w_p w_q ||z_p - z_q||,   z = [x; y; pad].
    Only upper-triangular tile pairs are visited (off-diagonal tiles doubled).
    """
    B, N, D = x.shape
    By, M, Dy = y.shape
    assert B == By and D == Dy

    P0 = N + M
    if tile is None:
        # Biggest tile that comfortably fits scoped VMEM on v5e/v6e/v7x; per-step
        # cost is quadratic in tile vs fixed ~0.35us Pallas overhead, so for very
        # large clouds a sweep to 768/1024 on v6e gains a few % (keep <=512 on
        # v7x, 64 MiB physical VMEM, and on v5e, single vector-store slot).
        tile = min(512, _round_up(P0, 128))
    tile = _round_up(tile, 128)
    P = _round_up(P0, tile)
    n_tiles = P // tile
    K = D + 2                                    # augmented feature depth

    # ---- wrapper-side prep (one-time XLA ops, overlapped with the kernel) ----
    xf = x.astype(jnp.float32)
    yf = y.astype(jnp.float32)
    z = jnp.concatenate([xf, yf], axis=1)                     # (B, P0, D)
    z = jnp.pad(z, ((0, 0), (0, P - P0), (0, 0)))             # (B, P, D)
    z2 = jnp.sum(z * z, axis=-1, keepdims=True)               # (B, P, 1)
    one = jnp.ones_like(z2)
    # Feature augmentation so the MXU matmul emits d^2 directly:
    #   a_p . b_q = |z_p|^2 + |z_q|^2 - 2 z_p.z_q
    za = jnp.transpose(jnp.concatenate([z, one, z2], axis=-1), (0, 2, 1))         # (B, K, P)
    zb = jnp.transpose(jnp.concatenate([-2.0 * z, z2, one], axis=-1), (0, 2, 1))  # (B, K, P)

    # ---- trace-time tile-pair classification (piecewise-constant weights) ----
    # kinds: 0=xx  1=yy  2=xy  3=boundary (mixed tile)  4=dummy (coefficient 0)
    def tile_type(t):
        lo, hi = t * tile, (t + 1) * tile
        if hi <= N:
            return "x"
        if lo >= N + M:
            return "pad"
        if lo >= N and hi <= N + M:
            return "y"
        return "mix"

    ttypes = [tile_type(t) for t in range(n_tiles)]
    pairs = []
    for i in range(n_tiles):
        for j in range(i, n_tiles):
            ti, tj = ttypes[i], ttypes[j]
            if ti == "pad" or tj == "pad":
                continue                                   # all-zero weights: skip pair
            if ti == "mix" or tj == "mix":
                kind = 3
            elif ti == "x" and tj == "x":
                kind = 0
            elif ti == "y" and tj == "y":
                kind = 1
            else:
                kind = 2
            pairs.append((i, j, kind))
    n_real = len(pairs)

    # Megacore: split the pair list over a leading "parallel" axis when the
    # batch axis alone cannot feed both v7x TensorCores.
    n_splits = 2 if (B == 1 and n_real >= 2) else 1
    npps = -(-n_real // n_splits)                          # pairs per split
    pairs = pairs + [(0, 0, 4)] * (n_splits * npps - n_real)
    ii_arr = jnp.asarray([p[0] for p in pairs], dtype=jnp.int32)
    jj_arr = jnp.asarray([p[1] for p in pairs], dtype=jnp.int32)
    kk_arr = jnp.asarray([p[2] for p in pairs], dtype=jnp.int32)

    inv_n = 1.0 / N
    neg_inv_m = -1.0 / M
    bases = (1.0 / (N * N), 1.0 / (M * M), -1.0 / (N * M), 1.0, 0.0)

    def kernel(ii_ref, jj_ref, kk_ref, za_ref, zb_ref, o_ref, acc_ref):
        p = pl.program_id(2)

        @pl.when(p == 0)
        def _():
            acc_ref[...] = jnp.zeros_like(acc_ref)

        idx = pl.program_id(0) * npps + p
        ti = ii_ref[idx]
        tj = jj_ref[idx]
        kd = kk_ref[idx]

        # d^2 straight off the MXU: norms folded into the K = D+2 contraction.
        d2 = lax.dot_general(za_ref[0], zb_ref[0], (((0,), (0,)), ((), ())),
                             preferred_element_type=jnp.float32)          # (T, T)

        # Clamp MXU rounding noise; zero true self-pairs exactly (their real
        # contribution is 0, and this keeps sqrt away from noisy d2 ~ 0).
        # TODO(synk): sqrt still has an infinite derivative at d2 == 0 for
        # coincident points; forward is exact, jax.grad needs eps / custom VJP.
        row = lax.broadcasted_iota(jnp.int32, (tile, tile), 0)
        col = lax.broadcasted_iota(jnp.int32, (tile, tile), 1)
        self_pair = jnp.logical_and(ti == tj, row == col)
        d = jnp.sqrt(jnp.where(self_pair, 0.0, jnp.maximum(d2, 0.0)))     # EUP

        # Per-pair scalar coefficient: tile-kind base * triangular doubling.
        base = jnp.where(kd == 0, bases[0],
               jnp.where(kd == 1, bases[1],
               jnp.where(kd == 2, bases[2],
               jnp.where(kd == 3, bases[3], bases[4]))))
        coef = (base * jnp.where(ti == tj, 1.0, 2.0)).astype(jnp.float32)

        @pl.when(kd != 3)
        def _():      # uniform-weight tiles (and dummy pairs): scalar coefficient only
            acc_ref[...] += coef * d

        @pl.when(kd == 3)
        def _():      # boundary tiles: rebuild signed weights from global indices
            gi = ti * tile + row
            gj = tj * tile + col
            wi = jnp.where(gi < N, inv_n, jnp.where(gi < N + M, neg_inv_m, 0.0))
            wj = jnp.where(gj < N, inv_n, jnp.where(gj < N + M, neg_inv_m, 0.0))
            acc_ref[...] += coef * (wi * wj * d)

        @pl.when(p == npps - 1)
        def _():      # single deferred cross-lane/sublane reduce per (split, batch)
            tot = jnp.sum(acc_ref[...], keepdims=True)                    # (1, 1)
            o_ref[...] = (-0.5 * tot).reshape(o_ref.shape)

    n_pair_steps = n_splits * npps
    cost = pl.CostEstimate(
        flops=int(2 * B * n_pair_steps * tile * tile * K
                  + 6 * B * n_pair_steps * tile * tile),
        transcendentals=int(B * n_pair_steps * tile * tile),
        bytes_accessed=int(2 * B * K * P * 4 + n_splits * B * 4 + 3 * n_pair_steps * 4),
    )

    out = pl.pallas_call(
        kernel,
        out_shape=jax.ShapeDtypeStruct((n_splits * B, 1, 1), jnp.float32),
        grid_spec=pltpu.PrefetchScalarGridSpec(
            num_scalar_prefetch=3,
            grid=(n_splits, B, npps),
            in_specs=[
                pl.BlockSpec((1, K, tile),
                             lambda c, b, p, ii, jj, kk: (b, 0, ii[c * npps + p])),
                pl.BlockSpec((1, K, tile),
                             lambda c, b, p, ii, jj, kk: (b, 0, jj[c * npps + p])),
            ],
            out_specs=pl.BlockSpec((1, 1, 1),
                                   lambda c, b, p, ii, jj, kk: (c * B + b, 0, 0)),
            scratch_shapes=[pltpu.VMEM((tile, tile), jnp.float32)],
        ),
        compiler_params=pltpu.CompilerParams(
            dimension_semantics=("parallel", "parallel", "arbitrary")),
        cost_estimate=cost,
    )(ii_arr, jj_arr, kk_arr, za, zb)

    return jnp.sum(out.reshape(n_splits, B), axis=0)


class GeomWrapper:
    """JAX port of the torch GeomWrapper: call loss_fn, restore grad state."""

    def __init__(self, loss_fn) -> None:
        self.loss_fn = loss_fn

    def __call__(self, *args, **kwargs):
        # TODO(synk): torch.set_grad_enabled save/restore has no JAX equivalent
        # (autodiff is functional, no global grad state) — it is a no-op here.
        return self.loss_fn(*args, **kwargs)


def _reference_energy(x, y):
    """Pure-JAX reference for correctness checking."""
    def dsum(a, b):
        d = jnp.sqrt(jnp.maximum(
            jnp.sum((a[:, None, :] - b[None, :, :]) ** 2, -1), 0.0))
        return jnp.sum(d)

    def per_batch(xb, yb):
        n, m = xb.shape[0], yb.shape[0]
        return (dsum(xb, yb) / (n * m)
                - 0.5 * dsum(xb, xb) / (n * n)
                - 0.5 * dsum(yb, yb) / (m * m))

    return jax.vmap(per_batch)(x.astype(jnp.float32), y.astype(jnp.float32))


if __name__ == "__main__":
    key = jax.random.PRNGKey(0)
    k1, k2, k3, k4, k5, k6, k7, k8 = jax.random.split(key, 8)

    wrapper = GeomWrapper(energy_samples_loss)

    def check(xa, ya, **kw):
        loss = jax.block_until_ready(wrapper(xa, ya, **kw))
        ref = _reference_energy(xa, ya)
        assert loss.shape == ref.shape, (loss.shape, ref.shape)
        assert jnp.allclose(loss, ref, atol=2e-4, rtol=2e-4), (loss, ref)

    # 1) Small clouds, single (boundary) tile pair.
    check(jax.random.normal(k1, (2, 16, 4), jnp.float32),
          jax.random.normal(k2, (2, 16, 4), jnp.float32))

    # 2) Tiled / padded / triangular path (2x2 tile grid, boundary tiles).
    check(jax.random.normal(k3, (2, 100, 4), jnp.float32),
          jax.random.normal(k4, (2, 60, 4), jnp.float32), tile=128)

    # 3) Uniform-weight tile pairs (xx / xy / yy scalar-coefficient path).
    check(jax.random.normal(k5, (2, 128, 4), jnp.float32),
          jax.random.normal(k6, (2, 128, 4), jnp.float32), tile=128)

    # 4) B == 1: pair list split across the leading "parallel" axis (v7x megacore).
    check(jax.random.normal(k7, (1, 100, 4), jnp.float32),
          jax.random.normal(k8, (1, 60, 4), jnp.float32), tile=128)

    print("KERNEL_OK")
</pallas_src>

<mosaic_0001>
module attributes {stable_mosaic.version = 11 : i64} {
  func.func @kernel(%arg0: i32, %arg1: i32, %arg2: i32, %arg3: memref<1xi32, #tpu.memory_space<smem>>, %arg4: memref<1xi32, #tpu.memory_space<smem>>, %arg5: memref<1xi32, #tpu.memory_space<smem>>, %arg6: memref<1x6x128xf32, #tpu.memory_space<vmem>>, %arg7: memref<1x6x128xf32, #tpu.memory_space<vmem>>, %arg8: memref<1x1x1xf32, #tpu.memory_space<vmem>>, %arg9: memref<128x128xf32, #tpu.memory_space<vmem>>) attributes {dimension_semantics = [#tpu.dimension_semantics<parallel>, #tpu.dimension_semantics<parallel>, #tpu.dimension_semantics<arbitrary>], iteration_bounds = array<i64: 1, 2, 1>, scalar_prefetch = 3 : i64, scratch_operands = 1 : i64, tpu.core_type = #tpu.core_type<tc>, window_params = [{transform_indices = @transform_0, window_bounds = array<i64: 1, 6, 128>}, {transform_indices = @transform_1, window_bounds = array<i64: 1, 6, 128>}, {transform_indices = @transform_2, window_bounds = array<i64: 1, 1, 1>}]} {
    %c0_i32 = arith.constant 0 : i32
    %0 = arith.cmpi eq, %arg2, %c0_i32 : i32
    %1 = arith.extui %0 : i1 to i32
    %c0_i32_0 = arith.constant 0 : i32
    %2 = arith.cmpi ne, %1, %c0_i32_0 : i32
    scf.if %2 {
      %cst_23 = arith.constant 0.000000e+00 : f32
      %47 = vector.broadcast %cst_23 : f32 to vector<128x128xf32>
      %c0_24 = arith.constant 0 : index
      %c0_25 = arith.constant 0 : index
      %48 = vector.load %arg9[%c0_24, %c0_25] : memref<128x128xf32, #tpu.memory_space<vmem>>, vector<128x128xf32>
      tpu.vector_store %arg9[%c0_24, %c0_25], %47 {strides = array<i32>} : memref<128x128xf32, #tpu.memory_space<vmem>>, vector<128x128xf32>,
    } else {
    }
    %c1_i32 = arith.constant 1 : i32
    %3 = arith.muli %arg0, %c1_i32 : i32
    %4 = arith.addi %3, %arg2 : i32
    %5 = arith.index_cast %4 : i32 to index
    %6 = memref.load %arg3[%5] : memref<1xi32, #tpu.memory_space<smem>>
    %7 = arith.index_cast %4 : i32 to index
    %8 = memref.load %arg4[%7] : memref<1xi32, #tpu.memory_space<smem>>
    %9 = arith.index_cast %4 : i32 to index
    %10 = memref.load %arg5[%9] : memref<1xi32, #tpu.memory_space<smem>>
    %c0 = arith.constant 0 : index
    %c0_1 = arith.constant 0 : index
    %c0_2 = arith.constant 0 : index
    %11 = vector.load %arg6[%c0, %c0_1, %c0_2] : memref<1x6x128xf32, #tpu.memory_space<vmem>>, vector<1x6x128xf32>
    %12 = vector.shape_cast %11 : vector<1x6x128xf32> to vector<6x128xf32>
    %c0_3 = arith.constant 0 : index
    %c0_4 = arith.constant 0 : index
    %c0_5 = arith.constant 0 : index
    %13 = vector.load %arg7[%c0_3, %c0_4, %c0_5] : memref<1x6x128xf32, #tpu.memory_space<vmem>>, vector<1x6x128xf32>
    %14 = vector.shape_cast %13 : vector<1x6x128xf32> to vector<6x128xf32>
    %cst = arith.constant dense<0.000000e+00> : vector<128x128xf32>
    %15 = tpu.matmul %12, %14, %cst {dimension_numbers = #tpu.dot_dimension_numbers<[0], [0], [1], [1], [0, 1, 1, 1], [], []>} : vector<6x128xf32>, vector<6x128xf32>, vector<128x128xf32> -> vector<128x128xf32>
    %16 = tpu.iota {dimensions = array<i32: 0>} : vector<128x128xi32>
    %17 = tpu.iota {dimensions = array<i32: 1>} : vector<128x128xi32>
    %18 = arith.cmpi eq, %6, %8 : i32
    %19 = arith.cmpi eq, %16, %17 : vector<128x128xi32>
    %20 = vector.broadcast %18 : i1 to vector<128x128xi1>
    %21 = arith.andi %20, %19 : vector<128x128xi1>
    %cst_6 = arith.constant 0.000000e+00 : f32
    %22 = vector.broadcast %cst_6 : f32 to vector<128x128xf32>
    %23 = arith.maximumf %15, %22 : vector<128x128xf32>
    %cst_7 = arith.constant 0.000000e+00 : f32
    %24 = vector.broadcast %cst_7 : f32 to vector<128x128xf32>
    %25 = arith.select %21, %24, %23 : vector<128x128xi1>, vector<128x128xf32>
    %26 = math.sqrt %25 : vector<128x128xf32>
    %c0_i32_8 = arith.constant 0 : i32
    %27 = arith.cmpi eq, %10, %c0_i32_8 : i32
    %c1_i32_9 = arith.constant 1 : i32
    %28 = arith.cmpi eq, %10, %c1_i32_9 : i32
    %c2_i32 = arith.constant 2 : i32
    %29 = arith.cmpi eq, %10, %c2_i32 : i32
    %c3_i32 = arith.constant 3 : i32
    %30 = arith.cmpi eq, %10, %c3_i32 : i32
    %cst_10 = arith.constant 1.000000e+00 : f32
    %cst_11 = arith.constant 0.000000e+00 : f32
    %31 = arith.select %30, %cst_10, %cst_11 : f32
    %cst_12 = arith.constant -3.906250e-03 : f32
    %32 = arith.select %29, %cst_12, %31 : f32
    %cst_13 = arith.constant 3.906250e-03 : f32
    %33 = arith.select %28, %cst_13, %32 : f32
    %cst_14 = arith.constant 3.906250e-03 : f32
    %34 = arith.select %27, %cst_14, %33 : f32
    %35 = arith.cmpi eq, %6, %8 : i32
    %cst_15 = arith.constant 1.000000e+00 : f32
    %cst_16 = arith.constant 2.000000e+00 : f32
    %36 = arith.select %35, %cst_15, %cst_16 : f32
    %37 = arith.mulf %34, %36 : f32
    %c3_i32_17 = arith.constant 3 : i32
    %38 = arith.cmpi ne, %10, %c3_i32_17 : i32
    %39 = arith.extui %38 : i1 to i32
    %c0_i32_18 = arith.constant 0 : i32
    %40 = arith.cmpi ne, %39, %c0_i32_18 : i32
    scf.if %40 {
      %c0_23 = arith.constant 0 : index
      %c0_24 = arith.constant 0 : index
      %47 = vector.load %arg9[%c0_23, %c0_24] : memref<128x128xf32, #tpu.memory_space<vmem>>, vector<128x128xf32>
      %48 = vector.broadcast %37 : f32 to vector<128x128xf32>
      %49 = arith.mulf %48, %26 : vector<128x128xf32>
      %50 = arith.addf %47, %49 : vector<128x128xf32>
      %c0_25 = arith.constant 0 : index
      %c0_26 = arith.constant 0 : index
      %51 = vector.load %arg9[%c0_25, %c0_26] : memref<128x128xf32, #tpu.memory_space<vmem>>, vector<128x128xf32>
      tpu.vector_store %arg9[%c0_25, %c0_26], %50 {strides = array<i32>} : memref<128x128xf32, #tpu.memory_space<vmem>>, vector<128x128xf32>,
    } else {
    }
    %c3_i32_19 = arith.constant 3 : i32
    %41 = arith.cmpi eq, %10, %c3_i32_19 : i32
    %42 = arith.extui %41 : i1 to i32
    %c0_i32_20 = arith.constant 0 : i32
    %43 = arith.cmpi ne, %42, %c0_i32_20 : i32
    scf.if %43 {
      %c128_i32 = arith.constant 128 : i32
      %47 = arith.muli %6, %c128_i32 : i32
      %48 = vector.broadcast %47 : i32 to vector<128x128xi32>
      %49 = arith.addi %48, %16 : vector<128x128xi32>
      %c128_i32_23 = arith.constant 128 : i32
      %50 = arith.muli %8, %c128_i32_23 : i32
      %51 = vector.broadcast %50 : i32 to vector<128x128xi32>
      %52 = arith.addi %51, %17 : vector<128x128xi32>
      %c16_i32 = arith.constant 16 : i32
      %53 = vector.broadcast %c16_i32 : i32 to vector<128x128xi32>
      %54 = arith.cmpi slt, %49, %53 : vector<128x128xi32>
      %c32_i32 = arith.constant 32 : i32
      %55 = vector.broadcast %c32_i32 : i32 to vector<128x128xi32>
      %56 = arith.cmpi slt, %49, %55 : vector<128x128xi32>
      %cst_24 = arith.constant -6.250000e-02 : f32
      %cst_25 = arith.constant 0.000000e+00 : f32
      %57 = vector.broadcast %cst_24 : f32 to vector<128x128xf32>
      %58 = vector.broadcast %cst_25 : f32 to vector<128x128xf32>
      %59 = arith.select %56, %57, %58 : vector<128x128xi1>, vector<128x128xf32>
      %cst_26 = arith.constant 6.250000e-02 : f32
      %60 = vector.broadcast %cst_26 : f32 to vector<128x128xf32>
      %61 = arith.select %54, %60, %59 : vector<128x128xi1>, vector<128x128xf32>
      %c16_i32_27 = arith.constant 16 : i32
      %62 = vector.broadcast %c16_i32_27 : i32 to vector<128x128xi32>
      %63 = arith.cmpi slt, %52, %62 : vector<128x128xi32>
      %c32_i32_28 = arith.constant 32 : i32
      %64 = vector.broadcast %c32_i32_28 : i32 to vector<128x128xi32>
      %65 = arith.cmpi slt, %52, %64 : vector<128x128xi32>
      %cst_29 = arith.constant -6.250000e-02 : f32
      %cst_30 = arith.constant 0.000000e+00 : f32
      %66 = vector.broadcast %cst_29 : f32 to vector<128x128xf32>
      %67 = vector.broadcast %cst_30 : f32 to vector<128x128xf32>
      %68 = arith.select %65, %66, %67 : vector<128x128xi1>, vector<128x128xf32>
      %cst_31 = arith.constant 6.250000e-02 : f32
      %69 = vector.broadcast %cst_31 : f32 to vector<128x128xf32>
      %70 = arith.select %63, %69, %68 : vector<128x128xi1>, vector<128x128xf32>
      %c0_32 = arith.constant 0 : index
      %c0_33 = arith.constant 0 : index
      %71 = vector.load %arg9[%c0_32, %c0_33] : memref<128x128xf32, #tpu.memory_space<vmem>>, vector<128x128xf32>
      %72 = arith.mulf %61, %70 : vector<128x128xf32>
      %73 = arith.mulf %72, %26 : vector<128x128xf32>
      %74 = vector.broadcast %37 : f32 to vector<128x128xf32>
      %75 = arith.mulf %74, %73 : vector<128x128xf32>
      %76 = arith.addf %71, %75 : vector<128x128xf32>
      %c0_34 = arith.constant 0 : index
      %c0_35 = arith.constant 0 : index
      %77 = vector.load %arg9[%c0_34, %c0_35] : memref<128x128xf32, #tpu.memory_space<vmem>>, vector<128x128xf32>
      tpu.vector_store %arg9[%c0_34, %c0_35], %76 {strides = array<i32>} : memref<128x128xf32, #tpu.memory_space<vmem>>, vector<128x128xf32>,
    } else {
    }
    %c0_i32_21 = arith.constant 0 : i32
    %44 = arith.cmpi eq, %arg2, %c0_i32_21 : i32
    %45 = arith.extui %44 : i1 to i32
    %c0_i32_22 = arith.constant 0 : i32
    %46 = arith.cmpi ne, %45, %c0_i32_22 : i32
    scf.if %46 {
      %c0_23 = arith.constant 0 : index
      %c0_24 = arith.constant 0 : index
      %47 = vector.load %arg9[%c0_23, %c0_24] : memref<128x128xf32, #tpu.memory_space<vmem>>, vector<128x128xf32>
      %48 = vector.shape_cast %47 : vector<128x128xf32> to vector<1x128x128xf32>
      %cst_25 = arith.constant dense<0.000000e+00> : vector<1xf32>
      %49 = vector.multi_reduction <add>, %48, %cst_25 [1, 2] : vector<1x128x128xf32> to vector<1xf32>
      %50 = vector.shape_cast %49 : vector<1xf32> to vector<1x1x1xf32>
      %51 = vector.extract %50[0, 0, 0] : f32 from vector<1x1x1xf32>
      %52 = vector.broadcast %51 : f32 to vector<1x1xf32>
      %cst_26 = arith.constant -5.000000e-01 : f32
      %53 = vector.broadcast %cst_26 : f32 to vector<1x1xf32>
      %54 = arith.mulf %53, %52 : vector<1x1xf32>
      %55 = vector.shape_cast %54 : vector<1x1xf32> to vector<1x1x1xf32>
      %c0_27 = arith.constant 0 : index
      %c0_28 = arith.constant 0 : index
      %c0_29 = arith.constant 0 : index
      %56 = vector.load %arg8[%c0_27, %c0_28, %c0_29] : memref<1x1x1xf32, #tpu.memory_space<vmem>>, vector<1x1x1xf32>
      tpu.vector_store %arg8[%c0_27, %c0_28, %c0_29], %55 {strides = array<i32>} : memref<1x1x1xf32, #tpu.memory_space<vmem>>, vector<1x1x1xf32>,
    } else {
    }
    return
  }
  func.func @transform_0(%arg0: i32, %arg1: i32, %arg2: i32, %arg3: memref<1xi32, #tpu.memory_space<smem>>, %arg4: memref<1xi32, #tpu.memory_space<smem>>, %arg5: memref<1xi32, #tpu.memory_space<smem>>) -> (i32, i32, i32) {
    %c1_i32 = arith.constant 1 : i32
    %0 = arith.muli %arg0, %c1_i32 : i32
    %1 = arith.addi %0, %arg2 : i32
    %2 = arith.index_cast %1 : i32 to index
    %3 = memref.load %arg3[%2] : memref<1xi32, #tpu.memory_space<smem>>
    %c0_i32 = arith.constant 0 : i32
    %c0_i32_0 = arith.constant 0 : i32
    return %arg1, %c0_i32, %3 : i32, i32, i32
  }
  func.func @transform_1(%arg0: i32, %arg1: i32, %arg2: i32, %arg3: memref<1xi32, #tpu.memory_space<smem>>, %arg4: memref<1xi32, #tpu.memory_space<smem>>, %arg5: memref<1xi32, #tpu.memory_space<smem>>) -> (i32, i32, i32) {
    %c1_i32 = arith.constant 1 : i32
    %0 = arith.muli %arg0, %c1_i32 : i32
    %1 = arith.addi %0, %arg2 : i32
    %2 = arith.index_cast %1 : i32 to index
    %3 = memref.load %arg4[%2] : memref<1xi32, #tpu.memory_space<smem>>
    %c0_i32 = arith.constant 0 : i32
    %c0_i32_0 = arith.constant 0 : i32
    return %arg1, %c0_i32, %3 : i32, i32, i32
  }
  func.func @transform_2(%arg0: i32, %arg1: i32, %arg2: i32, %arg3: memref<1xi32, #tpu.memory_space<smem>>, %arg4: memref<1xi32, #tpu.memory_space<smem>>, %arg5: memref<1xi32, #tpu.memory_space<smem>>) -> (i32, i32, i32) {
    %c2_i32 = arith.constant 2 : i32
    %0 = arith.muli %arg0, %c2_i32 : i32
    %1 = arith.addi %0, %arg1 : i32
    %c0_i32 = arith.constant 0 : i32
    %c0_i32_0 = arith.constant 0 : i32
    %c0_i32_1 = arith.constant 0 : i32
    return %1, %c0_i32, %c0_i32_0 : i32, i32, i32
  }
}

</mosaic_0001>

<bundles_post_ra>
// kernel: tpu_custom_call.1
= control target key start
LH: loop header
LB: loop body
LE: loop exit
PB: predicated region body
PF: predicated region fallthrough
CT: control target
= control target key end

     0   :  { %s1292_s24 = smov 0   ;;  %s1294_s25 = smov 0   ;;  %s1671_s0 = inlined_call_operand.<no memory space> [shape: s32[1], index: 0, kind: input, shape index: {}]   ;;  %s1672_s1 = inlined_call_operand.<no memory space> [shape: s32[1], index: 1, kind: input, shape index: {}]   ;;  %s1673_s2 = inlined_call_operand.<no memory space> [shape: s32[1], index: 2, kind: input, shape index: {}]   ;;  %s1674_s3 = inlined_call_operand.vmem [shape: f32[2,6,128], index: 3, kind: input, shape index: {}]   ;;  %s1675_s4 = inlined_call_operand.vmem [shape: f32[2,6,128], index: 4, kind: input, shape index: {}]   ;;  %s1676_s5 = inlined_call_operand.vmem [shape: f32[2,1,1], index: 5, kind: output, shape index: {}]  }
   0x1   :  { %10 = sst [smem:[#allocation4]] %s1671_s0  ;;  %s1296_s26 = smov 0  }
   0x2   :  { %11 = sst [smem:[#allocation5]] %s1672_s1 }
   0x3   :  { %12 = sst [smem:[#allocation6]] %s1673_s2 }
   0x4 LB: > { %s33_s0 = sadd.s32 1, %s1245_s25  ;;  %p1096_p0 = scmp.ge.s32.totalorder %s1249_s26, 1  ;;  %s1249_s26 = sphi %s1296_s26, %s18_s26   ;;  %s1245_s25 = sphi %s1294_s25, %s1680_s25   ;;  %s1241_s24 = sphi %s1292_s24, %s1679_s24  }
   0x5   : > { %p35_p1 = scmp.ge.s32.totalorder %s33_s0, 2  ;;  %p175_p2 = scmp.lt.s32.totalorder %s1249_s26, 3 }
   0x7   : > { %s1682_s0 = smov (%p35_p1, %s33_s0), 0  ;;  %p176_p3 = pnand %p1096_p0, %p175_p2 }
   0x8   : > { %s1310_s1 = sld [smem:[#allocation4]] (!%p176_p3)  ;;  %p212_p4 = scmp.lt.s32.totalorder (!%p176_p3), %s1241_s24, 1  ;;  %v1251_v1 = vmov (!%p176_p3), 0.0   ;;  %vm346_vm0 = vcmask (!%p176_p3), 1045504   ;;  %vm297_vm1 = vcmask (!%p176_p3), 48128   ;;  %v495_v19 = vlaneseq (!%p176_p3) }
   0x9   : > { %179 = sbr.rel (%p176_p3) target bundleno = 737 (0x2e1), region = 28  ;;  %s1314_s2 = sld [smem:[#allocation5]] (!%p176_p3)  ;;  %243 = vst [vmem:[#allocation2] sm:$0xff] (!%p176_p3), %v1251_v1  ;;  %244 = vst [vmem:[#allocation2 + $0x8] sm:$0xff] (!%p176_p3), %v1251_v1 }
   0xa   : > { %245 = vst [vmem:[#allocation2 + $0x10] sm:$0xff] (!%p176_p3), %v1251_v1  ;;  %246 = vst [vmem:[#allocation2 + $0x18] sm:$0xff] (!%p176_p3), %v1251_v1  ;;  %s1348_s17 = sld [smem:[#allocation6]] (!%p176_p3)  ;;  %v1360_v20 = vshrl.u32 (!%p176_p3), %v495_v19, 7  ;;  %v1365_v22 = vand.u32 (!%p176_p3), 127, %v495_v19 }
   0xb   : > { %247 = vst [vmem:[#allocation2 + $0x20] sm:$0xff] (!%p176_p3), %v1251_v1  ;;  %248 = vst [vmem:[#allocation2 + $0x28] sm:$0xff] (!%p176_p3), %v1251_v1 }
   0xc   : > { %249 = vst [vmem:[#allocation2 + $0x30] sm:$0xff] (!%p176_p3), %v1251_v1  ;;  %250 = vst [vmem:[#allocation2 + $0x38] sm:$0xff] (!%p176_p3), %v1251_v1  ;;  %v1363_v21 = vadd.s32 (!%p176_p3), 8, %v1360_v20  ;;  %vm515_vm4 = vcmp.eq.s32.totalorder (!%p176_p3), %v1360_v20, %v1365_v22  ;;  %v1378_v28 = vadd.s32 (!%p176_p3), 24, %v1360_v20  ;;  %v1383_v31 = vadd.s32 (!%p176_p3), 16, %v1360_v20 }
   0xd   : > { %251 = vst [vmem:[#allocation2 + $0x40] sm:$0xff] (!%p176_p3), %v1251_v1  ;;  %252 = vst [vmem:[#allocation2 + $0x48] sm:$0xff] (!%p176_p3), %v1251_v1  ;;  %v1392_v36 = vadd.s32 (!%p176_p3), 40, %v1360_v20  ;;  %v1397_v39 = vadd.s32 (!%p176_p3), 32, %v1360_v20  ;;  %v1406_v46 = vadd.s32 (!%p176_p3), 56, %v1360_v20  ;;  %v1416_v56 = vadd.s32 (!%p176_p3), 48, %v1360_v20 }
   0xe   : > { %p214_p5 = scmp.lt.s32.totalorder (!%p176_p3), %s1310_s1, 0  ;;  %253 = vst [vmem:[#allocation2 + $0x50] sm:$0xff] (!%p176_p3), %v1251_v1  ;;  %254 = vst [vmem:[#allocation2 + $0x58] sm:$0xff] (!%p176_p3), %v1251_v1  ;;  %vm516_vm2 = vcmp.eq.s32.totalorder (!%p176_p3), %v1363_v21, %v1365_v22  ;;  %vm518_vm7 = vcmp.eq.s32.totalorder (!%p176_p3), %v1378_v28, %v1365_v22  ;;  %vm517_vm8 = vcmp.eq.s32.totalorder (!%p176_p3), %v1383_v31, %v1365_v22 }
   0xf   : > { %p225_p6 = scmp.lt.s32.totalorder (!%p176_p3), %s1314_s2, 0  ;;  %255 = vst [vmem:[#allocation2 + $0x60] sm:$0xff] (!%p176_p3), %v1251_v1  ;;  %256 = vst [vmem:[#allocation2 + $0x68] sm:$0xff] (!%p176_p3), %v1251_v1  ;;  %p514_p10 = scmp.eq.s32.totalorder (!%p176_p3), %s1310_s1, %s1314_s2  ;;  %vm520_vm11 = vcmp.eq.s32.totalorder (!%p176_p3), %v1392_v36, %v1365_v22  ;;  %vm519_vm12 = vcmp.eq.s32.totalorder (!%p176_p3), %v1397_v39, %v1365_v22 }
  0x10   : > { %s1684_s24 = smov (!%p212_p4, %s1241_s24), 1  ;;  %257 = vst [vmem:[#allocation2 + $0x70] sm:$0xff] %v1251_v1  ;;  %258 = vst [vmem:[#allocation2 + $0x78] sm:$0xff] %v1251_v1  ;;  %p696_p7 = scmp.eq.s32.totalorder %s1348_s17, 2 }
  0x11   : > { %s236_s29 = scalar_lea.vmem %s1676_s5, %s1684_s24  ;;  %p697_p8 = scmp.eq.s32.totalorder %s1348_s17, 3 }
  0x12   : > { %s215_s30 = scalar_select %p214_p5, %s1310_s1, 0 }
  0x13   : > { %s226_s11 = scalar_select %p225_p6, %s1314_s2, 0 }
  0x14   : > { %s216_s6 = sadd.s32 %s215_s30, %s1684_s24  ;;  %p695_p9 = scmp.eq.s32.totalorder %s1348_s17, 1 }
  0x15   : > { %s1097_s7 = sshll.u32 %s216_s6, 3  ;;  %s227_s12 = sadd.s32 %s226_s11, %s1684_s24 }
  0x16   : > { %s218_s10 = scalar_lea.vmem %s1674_s3, %s1097_s7  ;;  %s1098_s13 = sshll.u32 %s227_s12, 3 }
  0x17   : > { %v263_v0 = vld [vmem:[%s218_s10] sm:$0x3f]  ;;  %s229_s16 = scalar_lea.vmem %s1675_s4, %s1098_s13  ;;  %p694_p11 = scmp.eq.s32.totalorder %s1348_s17, 0 }
  0x18   : > { %265 = vxpose.xlu0.b32.start.end [1/1] (short) %v263_v0, 128  ;;  %v264_v2 = vld [vmem:[%s229_s16] sm:$0x3f]  ;;  %s698_s18 = scalar_select %p697_p8, 1.0, 0.0  ;;  %v1427_v0 = vadd.s32 72, %v1360_v20 }
  0x19   : > { %1139 = vmatprep.subr.msk.mxu0 %vm346_vm0, %v264_v2  ;;  %1165 = vmatprep.subr.msk.mxu1 %vm346_vm0, %v264_v2  ;;  %s702_s19 = scalar_select %p514_p10, 1.0, 2.0 }
  0x1a   : > { %1140 = vmatpush3.msk.msra.mxu0 %vm346_vm0, %v264_v2  ;;  %1166 = vmatpush3.msk.msra.mxu1 %vm346_vm0, %v264_v2  ;;  %s1686_s18 = smov (%p696_p7, %s698_s18), -0.00390625 }
  0x1b   : > { %s1688_s18 = smov (%p695_p9, %s1686_s18), 0.00390625 }
  0x1c   : > { %s1690_s18 = smov (%p694_p11, %s1688_s18), 0.00390625 }
  0x1d   : > { %s1358_s20 = smul.f32 %s702_s19, %s1690_s18 }
  0x1e   : > { %s531_s21 = scalar_select %p514_p10, 1, 0 }
  0x20   : > { %v532_v23 = vstv %s531_s21 }
  0x21   : > { %vm1369_vm3 = vcmp.eq.s32.totalorder %v532_v23, 1 }
  0x22   : > { %vm535_vm5 = vmand %vm1369_vm3, %vm516_vm2 }
  0x23   : > { %vm534_vm6 = vmand %vm1369_vm3, %vm515_vm4  ;;  %vm522_vm4 = vcmp.eq.s32.totalorder %v1406_v46, %v1365_v22 }
  0x24   : > { %vm537_vm9 = vmand %vm1369_vm3, %vm518_vm7 }
  0x25   : > { %vm536_vm10 = vmand %vm1369_vm3, %vm517_vm8 }
  0x26   : > { %vm539_vm14 = vmand %vm1369_vm3, %vm520_vm11 }
  0x27   : > { %vm541_vm7 = vmand %vm1369_vm3, %vm522_vm4 }
  0x98   : > { %v281_v3 = vpop.trf.xlu0 }
  0x99   : > { %1141 = vmatprep.mubr.msk.f32.mxu0 %vm297_vm1, %v281_v3 }
  0x9c   : > { %v282_v4 = vpop.trf.xlu0 }
  0x9d   : > { %1142 = vmatmul.mubr.msk.f32.vlgmr.msra.gmra.mrb[0].mxu0 %vm297_vm1, %v282_v4 }
  0xa0   : > { %v283_v5 = vpop.trf.xlu0 }
  0xa1   : > { %1144 = vmatprep.mubr.msk.f32.mxu0 %vm297_vm1, %v283_v5 }
  0xa4   : > { %v284_v6 = vpop.trf.xlu0 }
  0xa5   : > { %1145 = vmatmul.mubr.msk.f32.gmra.mrb[2].mxu0 %vm297_vm1, %v284_v6 }
  0xa8   : > { %v285_v7 = vpop.trf.xlu0 }
  0xa9   : > { %1147 = vmatprep.mubr.msk.f32.mxu0 %vm297_vm1, %v285_v7 }
  0xac   : > { %v286_v8 = vpop.trf.xlu0 }
  0xad   : > { %1148 = vmatmul.mubr.msk.f32.gmra.mrb[4].mxu0 %vm297_vm1, %v286_v8 }
  0xb0   : > { %v287_v9 = vpop.trf.xlu0 }
  0xb1   : > { %1150 = vmatprep.mubr.msk.f32.mxu0 %vm297_vm1, %v287_v9 }
  0xb4   : > { %v288_v10 = vpop.trf.xlu0 }
  0xb5   : > { %1151 = vmatmul.mubr.msk.f32.gmra.mrb[6].mxu0 %vm297_vm1, %v288_v10  ;;  %v1437_v10 = vadd.s32 64, %v1360_v20 }
  0xb8   : > { %v289_v11 = vpop.trf.xlu0 }
  0xb9   : > { %1153 = vmatprep.mubr.msk.f32.mxu1 %vm297_vm1, %v289_v11 }
  0xbc   : > { %v290_v12 = vpop.trf.xlu0 }
  0xbd   : > { %1154 = vmatmul.mubr.msk.f32.vlgmr.msra.gmra.mrb[0].mxu1 %vm297_vm1, %v290_v12 }
  0xc0   : > { %v291_v13 = vpop.trf.xlu0 }
  0xc1   : > { %1156 = vmatprep.mubr.msk.f32.mxu1 %vm297_vm1, %v291_v13 }
  0xc4   : > { %v292_v14 = vpop.trf.xlu0 }
  0xc5   : > { %1157 = vmatmul.mubr.msk.f32.gmra.mrb[2].mxu1 %vm297_vm1, %v292_v14 }
  0xc8   : > { %v293_v15 = vpop.trf.xlu0 }
  0xc9   : > { %1159 = vmatprep.mubr.msk.f32.mxu1 %vm297_vm1, %v293_v15 }
  0xcc   : > { %v294_v16 = vpop.trf.xlu0 }
  0xcd   : > { %1160 = vmatmul.mubr.msk.f32.gmra.mrb[4].mxu1 %vm297_vm1, %v294_v16 }
  0xd0   : > { %v295_v17 = vpop.trf.xlu0 }
  0xd1   : > { %1162 = vmatprep.mubr.msk.f32.mxu1 %vm297_vm1, %v295_v17 }
  0xd4   : > { %v296_v18 = vpop.trf.xlu0 }
  0xd5   : > { %1163 = vmatmul.mubr.msk.f32.gmra.mrb[6].mxu1 %vm297_vm1, %v296_v18  ;;  %vm538_vm1 = vmand %vm1369_vm3, %vm519_vm12  ;;  %vm524_vm12 = vcmp.eq.s32.totalorder %v1427_v0, %v1365_v22  ;;  %v1448_v18 = vadd.s32 88, %v1360_v20 }
 0x170   : > { %v1143_v25 = vpop.f32.mrb[0].mxu0 }
 0x171   : > { %v551_v26 = vmax.f32 %v1143_v25, 0.0  ;;  %v416_v27 = vpop.f32.mrb[1].mxu0 }
 0x172   : > { %v550_v29 = vmax.f32 %v416_v27, 0.0 }
 0x173   : > { %v567_v30 = vsel %vm535_vm5, 0.0, %v551_v26  ;;  %vm521_vm5 = vcmp.eq.s32.totalorder %v1416_v56, %v1365_v22 }
 0x174   : > { %1195 = vrsqrt.f32 %v567_v30  ;;  %v566_v32 = vsel %vm534_vm6, 0.0, %v550_v29  ;;  %vm591_vm13 = vcmp.eq.f32.partialorder %v567_v30, inf  ;;  %v594_v44 = vand.u32 2147483648, %v567_v30 }
 0x175   : > { %1197 = vrsqrt.f32 %v566_v32  ;;  %vm593_vm15 = vcmp.eq.f32.partialorder %v567_v30, 0.0  ;;  %vm584_vm0 = vcmp.eq.f32.partialorder %v566_v32, inf  ;;  %v587_v52 = vand.u32 2147483648, %v566_v32 }
 0x176   : > { %vm586_vm2 = vcmp.eq.f32.partialorder %v566_v32, 0.0 }
 0x178   : > { %v1146_v33 = vpop.f32.mrb[2].mxu0 }
 0x179   : > { %v553_v34 = vmax.f32 %v1146_v33, 0.0  ;;  %v426_v35 = vpop.f32.mrb[3].mxu0 }
 0x17a   : > { %v552_v37 = vmax.f32 %v426_v35, 0.0 }
 0x17b   : > { %v569_v38 = vsel %vm537_vm9, 0.0, %v553_v34  ;;  %v1458_v34 = vadd.s32 80, %v1360_v20 }
 0x17c   : > { %1199 = vrsqrt.f32 %v569_v38  ;;  %v568_v40 = vsel %vm536_vm10, 0.0, %v552_v37  ;;  %vm605_vm6 = vcmp.eq.f32.partialorder %v569_v38, inf  ;;  %v608_v62 = vand.u32 2147483648, %v569_v38  ;;  %vm540_vm10 = vmand %vm1369_vm3, %vm521_vm5 }
 0x17d   : > { %1201 = vrsqrt.f32 %v568_v40  ;;  %vm607_vm8 = vcmp.eq.f32.partialorder %v569_v38, 0.0  ;;  %vm598_vm9 = vcmp.eq.f32.partialorder %v568_v40, inf  ;;  %v601_v6 = vand.u32 2147483648, %v568_v40 }
 0x17e   : > { %v1196_v41 = vpop.eup %1195  ;;  %vm600_vm11 = vcmp.eq.f32.partialorder %v568_v40, 0.0  ;;  %vm526_vm5 = vcmp.eq.s32.totalorder %v1448_v18, %v1365_v22 }
 0x17f   : > { %v590_v42 = vmul.f32 %v1196_v41, %v567_v30  ;;  %v1198_v43 = vpop.eup %1197 }
 0x180   : > { %v1149_v45 = vpop.f32.mrb[4].mxu0  ;;  %v583_v48 = vmul.f32 %v1198_v43, %v566_v32 }
 0x181   : > { %v592_v47 = vsel %vm591_vm13, %v567_v30, %v590_v42  ;;  %v555_v49 = vmax.f32 %v1149_v45, 0.0  ;;  %v436_v50 = vpop.f32.mrb[5].mxu0  ;;  %vm523_vm13 = vcmp.eq.s32.totalorder %v1437_v10, %v1365_v22 }
 0x182   : > { %v1408_v51 = vsel %vm593_vm15, %v594_v44, %v592_v47  ;;  %v554_v53 = vmax.f32 %v436_v50, 0.0  ;;  %v585_v54 = vsel %vm584_vm0, %v566_v32, %v583_v48  ;;  %vm543_vm15 = vmand %vm1369_vm3, %vm524_vm12  ;;  %v1469_v44 = vadd.s32 104, %v1360_v20 }
 0x183   : > { %v571_v55 = vsel %vm539_vm14, 0.0, %v555_v49  ;;  %v1418_v57 = vsel %vm586_vm2, %v587_v52, %v585_v54  ;;  %vm542_vm2 = vmand %vm1369_vm3, %vm523_vm13 }
 0x184   : > { %1203 = vrsqrt.f32 %v571_v55  ;;  %v570_v58 = vsel %vm538_vm1, 0.0, %v554_v53  ;;  %vm619_vm14 = vcmp.eq.f32.partialorder %v571_v55, inf  ;;  %v622_v16 = vand.u32 2147483648, %v571_v55 }
 0x185   : > { %1205 = vrsqrt.f32 %v570_v58  ;;  %vm621_vm0 = vcmp.eq.f32.partialorder %v571_v55, 0.0  ;;  %vm612_vm1 = vcmp.eq.f32.partialorder %v570_v58, inf  ;;  %v615_v29 = vand.u32 2147483648, %v570_v58 }
 0x186   : > { %v1200_v59 = vpop.eup %1199  ;;  %vm614_vm4 = vcmp.eq.f32.partialorder %v570_v58, 0.0  ;;  %vm528_vm13 = vcmp.eq.s32.totalorder %v1469_v44, %v1365_v22 }
 0x187   : > { %v604_v60 = vmul.f32 %v1200_v59, %v569_v38  ;;  %v1202_v61 = vpop.eup %1201 }
 0x188   : > { %v1152_v63 = vpop.f32.mrb[6].mxu0  ;;  %v597_v2 = vmul.f32 %v1202_v61, %v568_v40 }
 0x189   : > { %v606_v1 = vsel %vm605_vm6, %v569_v38, %v604_v60  ;;  %v557_v3 = vmax.f32 %v1152_v63, 0.0  ;;  %v446_v4 = vpop.f32.mrb[7].mxu0  ;;  %vm525_vm6 = vcmp.eq.s32.totalorder %v1458_v34, %v1365_v22 }
 0x18a   : > { %v1429_v5 = vsel %vm607_vm8, %v608_v62, %v606_v1  ;;  %v556_v7 = vmax.f32 %v446_v4, 0.0  ;;  %v599_v8 = vsel %vm598_vm9, %v568_v40, %v597_v2  ;;  %vm545_vm8 = vmand %vm1369_vm3, %vm526_vm5 }
 0x18b   : > { %v573_v9 = vsel %vm541_vm7, 0.0, %v557_v3  ;;  %v1439_v11 = vsel %vm600_vm11, %v601_v6, %v599_v8  ;;  %vm544_vm11 = vmand %vm1369_vm3, %vm525_vm6  ;;  %v1490_v3 = vadd.s32 120, %v1360_v20 }
 0x18c   : > { %1207 = vrsqrt.f32 %v573_v9  ;;  %v572_v12 = vsel %vm540_vm10, 0.0, %v556_v7  ;;  %vm633_vm7 = vcmp.eq.f32.partialorder %v573_v9, inf  ;;  %v636_v42 = vand.u32 2147483648, %v573_v9 }
 0x18d   : > { %1209 = vrsqrt.f32 %v572_v12  ;;  %vm635_vm9 = vcmp.eq.f32.partialorder %v573_v9, 0.0  ;;  %vm626_vm10 = vcmp.eq.f32.partialorder %v572_v12, inf  ;;  %v629_v52 = vand.u32 2147483648, %v572_v12 }
 0x18e   : > { %v1204_v13 = vpop.eup %1203  ;;  %vm628_vm12 = vcmp.eq.f32.partialorder %v572_v12, 0.0  ;;  %vm530_vm6 = vcmp.eq.s32.totalorder %v1490_v3, %v1365_v22 }
 0x18f   : > { %v618_v14 = vmul.f32 %v1204_v13, %v571_v55  ;;  %v1206_v15 = vpop.eup %1205 }
 0x190   : > { %v1155_v17 = vpop.f32.mrb[0].mxu1  ;;  %v611_v23 = vmul.f32 %v1206_v15, %v570_v58 }
 0x191   : > { %v620_v19 = vsel %vm619_vm14, %v571_v55, %v618_v14  ;;  %v559_v25 = vmax.f32 %v1155_v17, 0.0  ;;  %v456_v26 = vpop.f32.mrb[1].mxu1 }
 0x192   : > { %v1450_v27 = vsel %vm621_vm0, %v622_v16, %v620_v19  ;;  %v558_v30 = vmax.f32 %v456_v26, 0.0  ;;  %v613_v32 = vsel %vm612_vm1, %v570_v58, %v611_v23  ;;  %v1479_v58 = vadd.s32 96, %v1360_v20  ;;  %vm547_vm0 = vmand %vm1369_vm3, %vm528_vm13 }
 0x193   : > { %v575_v33 = vsel %vm543_vm15, 0.0, %v559_v25  ;;  %v1460_v35 = vsel %vm614_vm4, %v615_v29, %v613_v32  ;;  %v1500_v16 = vadd.s32 112, %v1360_v20 }
 0x194   : > { %1211 = vrsqrt.f32 %v575_v33  ;;  %v574_v37 = vsel %vm542_vm2, 0.0, %v558_v30  ;;  %vm527_vm14 = vcmp.eq.s32.totalorder %v1479_v58, %v1365_v22  ;;  %vm647_vm15 = vcmp.eq.f32.partialorder %v575_v33, inf }
 0x195   : > { %1213 = vrsqrt.f32 %v574_v37  ;;  %v650_v1 = vand.u32 2147483648, %v575_v33  ;;  %vm649_vm1 = vcmp.eq.f32.partialorder %v575_v33, 0.0  ;;  %vm640_vm2 = vcmp.eq.f32.partialorder %v574_v37, inf  ;;  %vm546_vm4 = vmand %vm1369_vm3, %vm527_vm14 }
 0x196   : > { %v1208_v38 = vpop.eup %1207  ;;  %vm642_vm5 = vcmp.eq.f32.partialorder %v574_v37, 0.0 }
 0x197   : > { %v632_v40 = vmul.f32 %v1208_v38, %v573_v9  ;;  %v1210_v41 = vpop.eup %1209 }
 0x198   : > { %v1158_v43 = vpop.f32.mrb[2].mxu1  ;;  %v625_v47 = vmul.f32 %v1210_v41, %v572_v12 }
 0x199   : > { %v634_v45 = vsel %vm633_vm7, %v573_v9, %v632_v40  ;;  %v561_v48 = vmax.f32 %v1158_v43, 0.0  ;;  %v466_v49 = vpop.f32.mrb[3].mxu1  ;;  %vm529_vm7 = vcmp.eq.s32.totalorder %v1500_v16, %v1365_v22 }
 0x19a   : > { %v1471_v50 = vsel %vm635_vm9, %v636_v42, %v634_v45  ;;  %v560_v53 = vmax.f32 %v466_v49, 0.0  ;;  %v627_v54 = vsel %vm626_vm10, %v572_v12, %v625_v47  ;;  %v643_v12 = vand.u32 2147483648, %v574_v37  ;;  %vm549_vm9 = vmand %vm1369_vm3, %vm530_vm6 }
 0x19b   : > { %v577_v55 = vsel %vm545_vm8, 0.0, %v561_v48  ;;  %v1481_v59 = vsel %vm628_vm12, %v629_v52, %v627_v54  ;;  %vm548_vm12 = vmand %vm1369_vm3, %vm529_vm7 }
 0x19c   : > { %1215 = vrsqrt.f32 %v577_v55  ;;  %v576_v60 = vsel %vm544_vm11, 0.0, %v560_v53  ;;  %vm661_vm8 = vcmp.eq.f32.partialorder %v577_v55, inf  ;;  %v664_v29 = vand.u32 2147483648, %v577_v55 }
 0x19d   : > { %1217 = vrsqrt.f32 %v576_v60  ;;  %vm663_vm10 = vcmp.eq.f32.partialorder %v577_v55, 0.0  ;;  %vm654_vm11 = vcmp.eq.f32.partialorder %v576_v60, inf  ;;  %v657_v41 = vand.u32 2147483648, %v576_v60 }
 0x19e   : > { %v1212_v61 = vpop.eup %1211  ;;  %vm656_vm13 = vcmp.eq.f32.partialorder %v576_v60, 0.0 }
 0x19f   : > { %v646_v62 = vmul.f32 %v1212_v61, %v575_v33  ;;  %v1214_v63 = vpop.eup %1213 }
 0x1a0   : > { %v1161_v2 = vpop.f32.mrb[4].mxu1  ;;  %v639_v6 = vmul.f32 %v1214_v63, %v574_v37 }
 0x1a1   : > { %v648_v4 = vsel %vm647_vm15, %v575_v33, %v646_v62  ;;  %v563_v7 = vmax.f32 %v1161_v2, 0.0  ;;  %v476_v8 = vpop.f32.mrb[5].mxu1 }
 0x1a2   : > { %v1492_v9 = vsel %vm649_vm1, %v650_v1, %v648_v4  ;;  %v562_v13 = vmax.f32 %v476_v8, 0.0  ;;  %v641_v14 = vsel %vm640_vm2, %v574_v37, %v639_v6 }
 0x1a3   : > { %v579_v15 = vsel %vm547_vm0, 0.0, %v563_v7  ;;  %v1502_v17 = vsel %vm642_vm5, %v643_v12, %v641_v14 }
 0x1a4   : > { %1219 = vrsqrt.f32 %v579_v15  ;;  %v578_v19 = vsel %vm546_vm4, 0.0, %v562_v13  ;;  %vm675_vm14 = vcmp.eq.f32.partialorder %v579_v15, inf  ;;  %v678_v54 = vand.u32 2147483648, %v579_v15 }
 0x1a5   : > { %1221 = vrsqrt.f32 %v578_v19  ;;  %vm677_vm15 = vcmp.eq.f32.partialorder %v579_v15, 0.0  ;;  %vm668_vm3 = vcmp.eq.f32.partialorder %v578_v19, inf  ;;  %v671_v24 = vand.u32 2147483648, %v578_v19 }
 0x1a6   : > { %v1216_v23 = vpop.eup %1215  ;;  %vm670_vm0 = vcmp.eq.f32.partialorder %v578_v19, 0.0 }
 0x1a7   : > { %v660_v25 = vmul.f32 %v1216_v23, %v577_v55  ;;  %v1218_v26 = vpop.eup %1217  ;;  %v724_v23 = vstv (!%p697_p8), %s1358_s20 }
 0x1a8   : > { %v1164_v30 = vpop.f32.mrb[6].mxu1  ;;  %v653_v33 = vmul.f32 %v1218_v26, %v576_v60  ;;  %v710_v26 = vld [vmem:[#allocation2 + $0x10] sm:$0xff] (!%p697_p8) }
 0x1a9   : > { %v662_v32 = vsel %vm661_vm8, %v577_v55, %v660_v25  ;;  %v565_v37 = vmax.f32 %v1164_v30, 0.0  ;;  %v486_v38 = vpop.f32.mrb[7].mxu1  ;;  %v709_v25 = vld [vmem:[#allocation2 + $0x8] sm:$0xff] (!%p697_p8)  ;;  %v726_v30 = vmul.f32 (!%p697_p8), %v724_v23, %v1408_v51 }
 0x1aa   : > { %v1510_v40 = vsel %vm663_vm10, %v664_v29, %v662_v32  ;;  %v564_v42 = vmax.f32 %v486_v38, 0.0  ;;  %v655_v43 = vsel %vm654_vm11, %v576_v60, %v653_v33  ;;  %v725_v29 = vmul.f32 (!%p697_p8), %v724_v23, %v1418_v57  ;;  %v711_v33 = vld [vmem:[#allocation2 + $0x18] sm:$0xff] (!%p697_p8)  ;;  %v712_v38 = vld [vmem:[#allocation2 + $0x20] sm:$0xff] (!%p697_p8) }
 0x1ab   : > { %v581_v45 = vsel %vm549_vm9, 0.0, %v565_v37  ;;  %v1514_v47 = vsel %vm656_vm13, %v657_v41, %v655_v43  ;;  %v727_v32 = vmul.f32 (!%p697_p8), %v724_v23, %v1439_v11  ;;  %v728_v37 = vmul.f32 (!%p697_p8), %v724_v23, %v1429_v5  ;;  %v713_v41 = vld [vmem:[#allocation2 + $0x28] sm:$0xff] (!%p697_p8) }
 0x1ac   : > { %1223 = vrsqrt.f32 %v581_v45  ;;  %v580_v48 = vsel %vm548_vm12, 0.0, %v564_v42  ;;  %vm689_vm1 = vcmp.eq.f32.partialorder %v581_v45, inf  ;;  %v692_v6 = vand.u32 2147483648, %v581_v45 }
 0x1ad   : > { %1225 = vrsqrt.f32 %v580_v48  ;;  %vm691_vm2 = vcmp.eq.f32.partialorder %v581_v45, 0.0  ;;  %vm682_vm4 = vcmp.eq.f32.partialorder %v580_v48, inf  ;;  %v685_v13 = vand.u32 2147483648, %v580_v48 }
 0x1ae   : > { %v1220_v49 = vpop.eup %1219  ;;  %vm684_vm5 = vcmp.eq.f32.partialorder %v580_v48, 0.0  ;;  %v729_v42 = vmul.f32 (!%p697_p8), %v724_v23, %v1460_v35  ;;  %v730_v43 = vmul.f32 (!%p697_p8), %v724_v23, %v1450_v27 }
 0x1af   : > { %v674_v52 = vmul.f32 %v1220_v49, %v579_v15  ;;  %v1222_v53 = vpop.eup %1221  ;;  %v715_v49 = vld [vmem:[#allocation2 + $0x38] sm:$0xff] (!%p697_p8) }
 0x1b0   : > { %v667_v61 = vmul.f32 %v1222_v53, %v578_v19 }
 0x1b1   : > { %v676_v55 = vsel %vm675_vm14, %v579_v15, %v674_v52  ;;  %v732_v52 = vmul.f32 (!%p697_p8), %v724_v23, %v1471_v50 }
 0x1b2   : > { %v1516_v62 = vsel %vm677_vm15, %v678_v54, %v676_v55  ;;  %v669_v63 = vsel %vm668_vm3, %v578_v19, %v667_v61  ;;  %v708_v19 = vld [vmem:[#allocation2] sm:$0xff] (!%p697_p8)  ;;  %v742_v54 = vadd.f32 (!%p697_p8), %v726_v30, %v709_v25  ;;  %v743_v55 = vadd.f32 (!%p697_p8), %v727_v32, %v710_v26  ;;  %v722_v30 = vld [vmem:[#allocation2 + $0x70] sm:$0xff] (!%p697_p8)  ;;  %v723_v32 = vld [vmem:[#allocation2 + $0x78] sm:$0xff] (!%p697_p8) }
 0x1b3   : > { %v1518_v60 = vsel %vm670_vm0, %v671_v24, %v669_v63  ;;  %v741_v53 = vadd.f32 (!%p697_p8), %v725_v29, %v708_v19  ;;  %v744_v61 = vadd.f32 (!%p697_p8), %v728_v37, %v711_v33  ;;  %v716_v24 = vld [vmem:[#allocation2 + $0x40] sm:$0xff] (!%p697_p8)  ;;  %v717_v63 = vld [vmem:[#allocation2 + $0x48] sm:$0xff] (!%p697_p8)  ;;  %v734_v19 = vmul.f32 (!%p697_p8), %v724_v23, %v1492_v9 }
 0x1b4   : > { %758 = vst [vmem:[#allocation2 + $0x8] sm:$0xff] (!%p697_p8), %v742_v54  ;;  %759 = vst [vmem:[#allocation2 + $0x10] sm:$0xff] (!%p697_p8), %v743_v55  ;;  %v735_v25 = vmul.f32 (!%p697_p8), %v724_v23, %v1514_v47  ;;  %v736_v26 = vmul.f32 (!%p697_p8), %v724_v23, %v1510_v40  ;;  %v721_v29 = vld [vmem:[#allocation2 + $0x68] sm:$0xff] (!%p697_p8)  ;;  %v737_v33 = vmul.f32 (!%p697_p8), %v724_v23, %v1518_v60 }
 0x1b5   : > { %707 = sbr.rel (%p697_p8) target bundleno = 450 (0x1c2), region = 36  ;;  %757 = vst [vmem:[#allocation2] sm:$0xff] (!%p697_p8), %v741_v53  ;;  %760 = vst [vmem:[#allocation2 + $0x18] sm:$0xff] (!%p697_p8), %v744_v61  ;;  %v738_v37 = vmul.f32 (!%p697_p8), %v724_v23, %v1516_v62 }
 0x1b6   : > { %v1224_v1 = vpop.eup %1223 }
 0x1b7   : > { %v688_v2 = vmul.f32 %v1224_v1, %v581_v45  ;;  %v1226_v4 = vpop.eup %1225  ;;  %v745_v1 = vadd.f32 (!%p697_p8), %v729_v42, %v712_v38 }
 0x1b8   : > { %v681_v8 = vmul.f32 %v1226_v4, %v580_v48 }
 0x1b9   : > { %v690_v7 = vsel %vm689_vm1, %v581_v45, %v688_v2  ;;  %v714_v45 = vld [vmem:[#allocation2 + $0x30] sm:$0xff] (!%p697_p8)  ;;  %v746_v2 = vadd.f32 (!%p697_p8), %v730_v43, %v713_v41  ;;  %761 = vst [vmem:[#allocation2 + $0x20] sm:$0xff] (!%p697_p8), %v745_v1  ;;  %v750_v43 = vadd.f32 (!%p697_p8), %v734_v19, %v717_v63 }
 0x1ba   : > { %v1520_v12 = vsel %vm691_vm2, %v692_v6, %v690_v7  ;;  %v683_v14 = vsel %vm682_vm4, %v580_v48, %v681_v8  ;;  %v731_v48 = vmul.f32 (!%p697_p8), %v724_v23, %v1481_v59  ;;  %v748_v6 = vadd.f32 (!%p697_p8), %v732_v52, %v715_v49  ;;  %v718_v7 = vld [vmem:[#allocation2 + $0x50] sm:$0xff] (!%p697_p8)  ;;  %v719_v8 = vld [vmem:[#allocation2 + $0x58] sm:$0xff] (!%p697_p8) }
 0x1bb   : > { %v1522_v15 = vsel %vm684_vm5, %v685_v13, %v683_v14  ;;  %v720_v13 = vld [vmem:[#allocation2 + $0x60] sm:$0xff] (!%p697_p8)  ;;  %v733_v14 = vmul.f32 (!%p697_p8), %v724_v23, %v1502_v17  ;;  %762 = vst [vmem:[#allocation2 + $0x28] sm:$0xff] (!%p697_p8), %v746_v2  ;;  %v740_v41 = vmul.f32 (!%p697_p8), %v724_v23, %v1520_v12  ;;  %v754_v52 = vadd.f32 (!%p697_p8), %v738_v37, %v721_v29 }
 0x1bc   : > { %v747_v4 = vadd.f32 %v731_v48, %v714_v45  ;;  %764 = vst [vmem:[#allocation2 + $0x38] sm:$0xff] %v748_v6  ;;  %v739_v38 = vmul.f32 %v724_v23, %v1522_v15  ;;  %v751_v45 = vadd.f32 %v735_v25, %v718_v7  ;;  %v752_v48 = vadd.f32 %v736_v26, %v719_v8 }
 0x1bd   : > { %v749_v42 = vadd.f32 %v733_v14, %v716_v24  ;;  %v753_v49 = vadd.f32 %v737_v33, %v720_v13  ;;  %v756_v54 = vadd.f32 %v740_v41, %v723_v32  ;;  %766 = vst [vmem:[#allocation2 + $0x48] sm:$0xff] %v750_v43  ;;  %770 = vst [vmem:[#allocation2 + $0x68] sm:$0xff] %v754_v52 }
 0x1be   : > { %763 = vst [vmem:[#allocation2 + $0x30] sm:$0xff] %v747_v4  ;;  %v755_v53 = vadd.f32 %v739_v38, %v722_v30  ;;  %767 = vst [vmem:[#allocation2 + $0x50] sm:$0xff] %v751_v45 }
 0x1bf   : > { %765 = vst [vmem:[#allocation2 + $0x40] sm:$0xff] %v749_v42  ;;  %768 = vst [vmem:[#allocation2 + $0x58] sm:$0xff] %v752_v48 }
 0x1c0   : > { %769 = vst [vmem:[#allocation2 + $0x60] sm:$0xff] %v753_v49  ;;  %771 = vst [vmem:[#allocation2 + $0x70] sm:$0xff] %v755_v53 }
 0x1c1   : > { %772 = vst [vmem:[#allocation2 + $0x78] sm:$0xff] %v756_v54 }
 0x1c2 PF: > { %p1117_p12 = scmp.ne.s32.totalorder %s1348_s17, 3 }
 0x1c3   : > { %s1118_s22 = sshll.u32 (!%p1117_p12), %s1310_s1, 7  ;;  %s1119_s23 = sshll.u32 (!%p1117_p12), %s1314_s2, 7  ;;  %v1549_v61 = vstv (!%p1117_p12), %s1358_s20  ;;  %v865_v29 = vld [vmem:[#allocation2] sm:$0xff] (!%p1117_p12)  ;;  %v866_v41 = vld [vmem:[#allocation2 + $0x8] sm:$0xff] (!%p1117_p12)  ;;  %v867_v49 = vld [vmem:[#allocation2 + $0x10] sm:$0xff] (!%p1117_p12) }
 0x1c4   : > { %775 = sbr.rel (%p1117_p12) target bundleno = 498 (0x1f2), region = 40  ;;  %v1546_v23 = vstv (!%p1117_p12), %s1118_s22  ;;  %v795_v55 = vstv (!%p1117_p12), %s1119_s23 }
 0x1c5   : > { %v778_v24 = vadd.s32 (!%p1117_p12), %v1546_v23, %v1360_v20  ;;  %v796_v63 = vadd.s32 (!%p1117_p12), %v795_v55, %v1365_v22  ;;  %v779_v1 = vadd.s32 (!%p1117_p12), %v1546_v23, %v1363_v21  ;;  %v780_v2 = vadd.s32 (!%p1117_p12), %v1546_v23, %v1383_v31 }
 0x1c6   : > { %v781_v4 = vadd.s32 (!%p1117_p12), %v1546_v23, %v1378_v28  ;;  %v782_v6 = vadd.s32 (!%p1117_p12), %v1546_v23, %v1397_v39  ;;  %v783_v7 = vadd.s32 (!%p1117_p12), %v1546_v23, %v1392_v36  ;;  %v1566_v20 = vadd.s32 (!%p1117_p12), %v1546_v23, %v1416_v56 }
 0x1c7   : > { %vm797_vm6 = vcmp.lt.s32.totalorder (!%p1117_p12), %v778_v24, 16  ;;  %vm813_vm7 = vcmp.lt.s32.totalorder (!%p1117_p12), %v778_v24, 32  ;;  %vm861_vm8 = vcmp.lt.s32.totalorder (!%p1117_p12), %v796_v63, 16  ;;  %vm862_vm9 = vcmp.lt.s32.totalorder (!%p1117_p12), %v796_v63, 32  ;;  %v868_v24 = vld [vmem:[#allocation2 + $0x18] sm:$0xff] (!%p1117_p12) }
 0x1c8   : > { %v1252_v21 = vmov (!%p1117_p12), 0.0   ;;  %vm798_vm10 = vcmp.lt.s32.totalorder (!%p1117_p12), %v779_v1, 16  ;;  %vm814_vm11 = vcmp.lt.s32.totalorder (!%p1117_p12), %v779_v1, 32  ;;  %vm799_vm12 = vcmp.lt.s32.totalorder (!%p1117_p12), %v780_v2, 16 }
 0x1c9   : > { %v829_v22 = vsel (!%p1117_p12), %vm813_vm7, -0.0625, %v1252_v21  ;;  %v863_v31 = vsel (!%p1117_p12), %vm862_vm9, -0.0625, %v1252_v21  ;;  %v830_v36 = vsel (!%p1117_p12), %vm814_vm11, -0.0625, %v1252_v21  ;;  %vm815_vm13 = vcmp.lt.s32.totalorder (!%p1117_p12), %v780_v2, 32  ;;  %v869_v2 = vld [vmem:[#allocation2 + $0x20] sm:$0xff] (!%p1117_p12) }
 0x1ca   : > { %v845_v28 = vsel (!%p1117_p12), %vm797_vm6, 0.0625, %v829_v22  ;;  %v1570_v39 = vsel (!%p1117_p12), %vm861_vm8, 0.0625, %v863_v31  ;;  %v846_v8 = vsel (!%p1117_p12), %vm798_vm10, 0.0625, %v830_v36  ;;  %vm800_vm14 = vcmp.lt.s32.totalorder (!%p1117_p12), %v781_v4, 16 }
 0x1cb   : > { %v881_v56 = vmul.f32 %v1570_v39, %v845_v28  ;;  %v882_v13 = vmul.f32 %v1570_v39, %v846_v8  ;;  %v831_v14 = vsel %vm815_vm13, -0.0625, %v1252_v21  ;;  %vm816_vm15 = vcmp.lt.s32.totalorder %v781_v4, 32  ;;  %v870_v8 = vld [vmem:[#allocation2 + $0x28] sm:$0xff] }
 0x1cc   : > { %vm801_vm3 = vcmp.lt.s32.totalorder %v782_v6, 16  ;;  %v847_v25 = vsel %vm799_vm12, 0.0625, %v831_v14  ;;  %v832_v26 = vsel %vm816_vm15, -0.0625, %v1252_v21  ;;  %vm817_vm0 = vcmp.lt.s32.totalorder %v782_v6, 32 }
 0x1cd   : > { %v897_v19 = vmul.f32 %v881_v56, %v1418_v57  ;;  %v898_v30 = vmul.f32 %v882_v13, %v1408_v51  ;;  %v883_v32 = vmul.f32 %v1570_v39, %v847_v25  ;;  %v848_v33 = vsel %vm800_vm14, 0.0625, %v832_v26 }
 0x1ce   : > { %v833_v37 = vsel %vm817_vm0, -0.0625, %v1252_v21  ;;  %v884_v42 = vmul.f32 %v1570_v39, %v848_v33  ;;  %vm802_vm1 = vcmp.lt.s32.totalorder %v783_v7, 16  ;;  %vm818_vm2 = vcmp.lt.s32.totalorder %v783_v7, 32 }
 0x1cf   : > { %v914_v38 = vmul.f32 %v1549_v61, %v897_v19  ;;  %v849_v43 = vsel %vm801_vm3, 0.0625, %v833_v37  ;;  %v915_v57 = vmul.f32 %v1549_v61, %v898_v30  ;;  %v899_v45 = vmul.f32 %v883_v32, %v1439_v11 }
 0x1d0   : > { %v885_v48 = vmul.f32 %v1570_v39, %v849_v43  ;;  %v900_v52 = vmul.f32 %v884_v42, %v1429_v5  ;;  %v834_v53 = vsel %vm818_vm2, -0.0625, %v1252_v21  ;;  %vm803_vm4 = vcmp.lt.s32.totalorder %v1566_v20, 16 }
 0x1d1   : > { %v930_v51 = vadd.f32 %v914_v38, %v865_v29  ;;  %v931_v54 = vadd.f32 %v915_v57, %v866_v41  ;;  %v916_v55 = vmul.f32 %v1549_v61, %v899_v45  ;;  %v850_v1 = vsel %vm802_vm1, 0.0625, %v834_v53  ;;  %v871_v29 = vld [vmem:[#allocation2 + $0x30] sm:$0xff]  ;;  %v872_v41 = vld [vmem:[#allocation2 + $0x38] sm:$0xff] }
 0x1d2   : > { %v901_v63 = vmul.f32 %v885_v48, %v1460_v35  ;;  %v917_v11 = vmul.f32 %v1549_v61, %v900_v52  ;;  %v886_v4 = vmul.f32 %v1570_v39, %v850_v1  ;;  %vm819_vm5 = vcmp.lt.s32.totalorder %v1566_v20, 32  ;;  %v873_v48 = vld [vmem:[#allocation2 + $0x40] sm:$0xff] }
 0x1d3   : > { %946 = vst [vmem:[#allocation2] sm:$0xff] %v930_v51  ;;  %v785_v5 = vadd.s32 %v1546_v23, %v1406_v46  ;;  %947 = vst [vmem:[#allocation2 + $0x8] sm:$0xff] %v931_v54  ;;  %v932_v6 = vadd.f32 %v916_v55, %v867_v49  ;;  %v835_v22 = vsel %vm819_vm5, -0.0625, %v1252_v21  ;;  %v786_v35 = vadd.s32 %v1546_v23, %v1437_v10 }
 0x1d4   : > { %v918_v7 = vmul.f32 %v1549_v61, %v901_v63  ;;  %v933_v31 = vadd.f32 %v917_v11, %v868_v24  ;;  %v902_v28 = vmul.f32 %v886_v4, %v1450_v27  ;;  %v851_v36 = vsel %vm803_vm4, 0.0625, %v835_v22  ;;  %v874_v63 = vld [vmem:[#allocation2 + $0x48] sm:$0xff]  ;;  %v875_v4 = vld [vmem:[#allocation2 + $0x50] sm:$0xff] }
 0x1d5   : > { %vm804_vm6 = vcmp.lt.s32.totalorder %v785_v5, 16  ;;  %948 = vst [vmem:[#allocation2 + $0x10] sm:$0xff] %v932_v6  ;;  %v887_v46 = vmul.f32 %v1570_v39, %v851_v36  ;;  %vm820_vm7 = vcmp.lt.s32.totalorder %v785_v5, 32  ;;  %vm805_vm8 = vcmp.lt.s32.totalorder %v786_v35, 16 }
 0x1d6   : > { %v934_v56 = vadd.f32 %v918_v7, %v869_v2  ;;  %949 = vst [vmem:[#allocation2 + $0x18] sm:$0xff] %v933_v31  ;;  %v919_v13 = vmul.f32 %v1549_v61, %v902_v28  ;;  %v836_v14 = vsel %vm820_vm7, -0.0625, %v1252_v21  ;;  %vm821_vm9 = vcmp.lt.s32.totalorder %v786_v35, 32  ;;  %v876_v31 = vld [vmem:[#allocation2 + $0x58] sm:$0xff] }
 0x1d7   : > { %v787_v10 = vadd.s32 %v1546_v23, %v1427_v0  ;;  %v903_v27 = vmul.f32 %v887_v46, %v1481_v59  ;;  %v852_v20 = vsel %vm804_vm6, 0.0625, %v836_v14  ;;  %v837_v19 = vsel %vm821_vm9, -0.0625, %v1252_v21  ;;  %v877_v14 = vld [vmem:[#allocation2 + $0x60] sm:$0xff] }
 0x1d8   : > { %950 = vst [vmem:[#allocation2 + $0x20] sm:$0xff] %v934_v56  ;;  %v788_v25 = vadd.s32 %v1546_v23, %v1458_v34  ;;  %v935_v26 = vadd.f32 %v919_v13, %v870_v8  ;;  %v888_v30 = vmul.f32 %v1570_v39, %v852_v20  ;;  %v853_v32 = vsel %vm805_vm8, 0.0625, %v837_v19  ;;  %v878_v19 = vld [vmem:[#allocation2 + $0x68] sm:$0xff] }
 0x1d9   : > { %vm806_vm10 = vcmp.lt.s32.totalorder %v787_v10, 16  ;;  %v920_v33 = vmul.f32 %v1549_v61, %v903_v27  ;;  %v889_v37 = vmul.f32 %v1570_v39, %v853_v32  ;;  %vm822_vm11 = vcmp.lt.s32.totalorder %v787_v10, 32  ;;  %v879_v32 = vld [vmem:[#allocation2 + $0x70] sm:$0xff] }
 0x1da   : > { %vm807_vm12 = vcmp.lt.s32.totalorder %v788_v25, 16  ;;  %951 = vst [vmem:[#allocation2 + $0x28] sm:$0xff] %v935_v26  ;;  %v904_v0 = vmul.f32 %v888_v30, %v1471_v50  ;;  %v838_v59 = vsel %vm822_vm11, -0.0625, %v1252_v21  ;;  %vm823_vm13 = vcmp.lt.s32.totalorder %v788_v25, 32 }
 0x1db   : > { %v789_v34 = vadd.s32 %v1546_v23, %v1448_v18  ;;  %v936_v38 = vadd.f32 %v920_v33, %v871_v29  ;;  %v905_v42 = vmul.f32 %v889_v37, %v1502_v17  ;;  %v854_v43 = vsel %vm806_vm10, 0.0625, %v838_v59  ;;  %v880_v59 = vld [vmem:[#allocation2 + $0x78] sm:$0xff] }
 0x1dc   : > { %v839_v57 = vsel %vm823_vm13, -0.0625, %v1252_v21  ;;  %v921_v45 = vmul.f32 %v1549_v61, %v904_v0  ;;  %v890_v51 = vmul.f32 %v1570_v39, %v854_v43  ;;  %v790_v18 = vadd.s32 %v1546_v23, %v1479_v58 }
 0x1dd   : > { %v855_v49 = vsel %vm807_vm12, 0.0625, %v839_v57  ;;  %vm808_vm14 = vcmp.lt.s32.totalorder %v789_v34, 16  ;;  %952 = vst [vmem:[#allocation2 + $0x30] sm:$0xff] %v936_v38  ;;  %v922_v50 = vmul.f32 %v1549_v61, %v905_v42  ;;  %vm824_vm15 = vcmp.lt.s32.totalorder %v789_v34, 32 }
 0x1de   : > { %v891_v52 = vmul.f32 %v1570_v39, %v855_v49  ;;  %v937_v17 = vadd.f32 %v921_v45, %v872_v41  ;;  %v906_v53 = vmul.f32 %v890_v51, %v1492_v9  ;;  %v840_v54 = vsel %vm824_vm15, -0.0625, %v1252_v21 }
 0x1df   : > { %v791_v55 = vadd.s32 %v1546_v23, %v1469_v44  ;;  %v938_v24 = vadd.f32 %v922_v50, %v873_v48  ;;  %v856_v11 = vsel %vm808_vm14, 0.0625, %v840_v54  ;;  %vm809_vm3 = vcmp.lt.s32.totalorder %v790_v18, 16 }
 0x1e0   : > { %v907_v1 = vmul.f32 %v891_v52, %v1514_v47  ;;  %953 = vst [vmem:[#allocation2 + $0x38] sm:$0xff] %v937_v17  ;;  %v923_v2 = vmul.f32 %v1549_v61, %v906_v53  ;;  %v892_v58 = vmul.f32 %v1570_v39, %v856_v11  ;;  %vm825_vm0 = vcmp.lt.s32.totalorder %v790_v18, 32 }
 0x1e1   : > { %vm810_vm1 = vcmp.lt.s32.totalorder %v791_v55, 16  ;;  %954 = vst [vmem:[#allocation2 + $0x40] sm:$0xff] %v938_v24  ;;  %v841_v5 = vsel %vm825_vm0, -0.0625, %v1252_v21  ;;  %vm826_vm2 = vcmp.lt.s32.totalorder %v791_v55, 32  ;;  %v792_v44 = vadd.s32 %v1546_v23, %v1500_v16 }
 0x1e2   : > { %v924_v9 = vmul.f32 %v1549_v61, %v907_v1  ;;  %v939_v47 = vadd.f32 %v923_v2, %v874_v63  ;;  %v908_v6 = vmul.f32 %v892_v58, %v1510_v40  ;;  %v857_v7 = vsel %vm809_vm3, 0.0625, %v841_v5 }
 0x1e3   : > { %v842_v22 = vsel %vm826_vm2, -0.0625, %v1252_v21  ;;  %v893_v28 = vmul.f32 %v1570_v39, %v857_v7  ;;  %vm811_vm4 = vcmp.lt.s32.totalorder %v792_v44, 16  ;;  %vm827_vm5 = vcmp.lt.s32.totalorder %v792_v44, 32 }
 0x1e4   : > { %v940_v35 = vadd.f32 %v924_v9, %v875_v4  ;;  %v858_v36 = vsel %vm810_vm1, 0.0625, %v842_v22  ;;  %955 = vst [vmem:[#allocation2 + $0x48] sm:$0xff] %v939_v47  ;;  %v925_v56 = vmul.f32 %v1549_v61, %v908_v6  ;;  %v793_v16 = vadd.s32 %v1546_v23, %v1490_v3 }
 0x1e5   : > { %v894_v8 = vmul.f32 %v1570_v39, %v858_v36  ;;  %v909_v40 = vmul.f32 %v893_v28, %v1518_v60  ;;  %v843_v46 = vsel %vm827_vm5, -0.0625, %v1252_v21 }
 0x1e6   : > { %956 = vst [vmem:[#allocation2 + $0x50] sm:$0xff] %v940_v35  ;;  %v941_v13 = vadd.f32 %v925_v56, %v876_v31  ;;  %v859_v27 = vsel %vm811_vm4, 0.0625, %v843_v46  ;;  %vm812_vm6 = vcmp.lt.s32.totalorder %v793_v16, 16  ;;  %vm828_vm7 = vcmp.lt.s32.totalorder %v793_v16, 32 }
 0x1e7   : > { %v910_v10 = vmul.f32 %v894_v8, %v1516_v62  ;;  %v926_v20 = vmul.f32 %v1549_v61, %v909_v40  ;;  %v895_v25 = vmul.f32 %v1570_v39, %v859_v27  ;;  %v844_v23 = vsel %vm828_vm7, -0.0625, %v1252_v21 }
 0x1e8   : > { %957 = vst [vmem:[#allocation2 + $0x58] sm:$0xff] %v941_v13  ;;  %v860_v29 = vsel %vm812_vm6, 0.0625, %v844_v23 }
 0x1e9   : > { %v927_v3 = vmul.f32 %v1549_v61, %v910_v10  ;;  %v942_v60 = vadd.f32 %v926_v20, %v877_v14  ;;  %v911_v26 = vmul.f32 %v895_v25, %v1522_v15  ;;  %v896_v62 = vmul.f32 %v1570_v39, %v860_v29 }
 0x1eb   : > { %v943_v30 = vadd.f32 %v927_v3, %v878_v19  ;;  %958 = vst [vmem:[#allocation2 + $0x60] sm:$0xff] %v942_v60  ;;  %v928_v33 = vmul.f32 %v1549_v61, %v911_v26  ;;  %v912_v37 = vmul.f32 %v896_v62, %v1520_v12 }
 0x1ed   : > { %959 = vst [vmem:[#allocation2 + $0x68] sm:$0xff] %v943_v30  ;;  %v944_v0 = vadd.f32 %v928_v33, %v879_v32  ;;  %v929_v34 = vmul.f32 %v1549_v61, %v912_v37 }
 0x1ef   : > { %960 = vst [vmem:[#allocation2 + $0x70] sm:$0xff] %v944_v0  ;;  %v945_v21 = vadd.f32 %v929_v34, %v880_v59 }
 0x1f1   : > { %961 = vst [vmem:[#allocation2 + $0x78] sm:$0xff] %v945_v21 }
 0x1f2 PF: > { %v965_v15 = vld [vmem:[#allocation2] sm:$0xff]  ;;  %v966_v38 = vld [vmem:[#allocation2 + $0x8] sm:$0xff]  ;;  %v967_v41 = vld [vmem:[#allocation2 + $0x10] sm:$0xff]  ;;  %vm1007_vm8 = vcmask 0  }
 0x1f3   : > { %v981_v42 = vadd.f32 %v966_v38, %v965_v15  ;;  %v968_v43 = vld [vmem:[#allocation2 + $0x18] sm:$0xff]  ;;  %v969_v57 = vld [vmem:[#allocation2 + $0x20] sm:$0xff]  ;;  %v970_v48 = vld [vmem:[#allocation2 + $0x28] sm:$0xff] }
 0x1f4   : > { %v971_v49 = vld [vmem:[#allocation2 + $0x30] sm:$0xff]  ;;  %v972_v50 = vld [vmem:[#allocation2 + $0x38] sm:$0xff]  ;;  %v973_v18 = vld [vmem:[#allocation2 + $0x40] sm:$0xff] }
 0x1f5   : > { %v982_v39 = vadd.f32 %v981_v42, %v967_v41  ;;  %v974_v17 = vld [vmem:[#allocation2 + $0x48] sm:$0xff]  ;;  %v975_v54 = vld [vmem:[#allocation2 + $0x50] sm:$0xff]  ;;  %v976_v24 = vld [vmem:[#allocation2 + $0x58] sm:$0xff] }
 0x1f6   : > { %v977_v1 = vld [vmem:[#allocation2 + $0x60] sm:$0xff]  ;;  %v978_v2 = vld [vmem:[#allocation2 + $0x68] sm:$0xff]  ;;  %v979_v58 = vld [vmem:[#allocation2 + $0x70] sm:$0xff] }
 0x1f7   : > { %v983_v45 = vadd.f32 %v982_v39, %v968_v43 }
 0x1f8   : > { %v980_v5 = vld [vmem:[#allocation2 + $0x78] sm:$0xff] }
 0x1f9   : > { %v984_v51 = vadd.f32 %v983_v45, %v969_v57 }
 0x1fb   : > { %v985_v12 = vadd.f32 %v984_v51, %v970_v48 }
 0x1fd   : > { %v986_v52 = vadd.f32 %v985_v12, %v971_v49 }
 0x1ff   : > { %v987_v61 = vadd.f32 %v986_v52, %v972_v50 }
 0x201   : > { %v988_v53 = vadd.f32 %v987_v61, %v973_v18 }
 0x203   : > { %v989_v55 = vadd.f32 %v988_v53, %v974_v17 }
 0x205   : > { %v990_v63 = vadd.f32 %v989_v55, %v975_v54 }
 0x207   : > { %v991_v11 = vadd.f32 %v990_v63, %v976_v24 }
 0x209   : > { %v992_v4 = vadd.f32 %v991_v11, %v977_v1 }
 0x20b   : > { %v993_v9 = vadd.f32 %v992_v4, %v978_v2 }
 0x20d   : > { %v994_v44 = vadd.f32 %v993_v9, %v979_v58 }
 0x20f   : > { %v995_v47 = vadd.f32 %v994_v44, %v980_v5 }
 0x211   : > { %996 = vadd.xlane.f32.xlu0 %v995_v47 }
 0x29e   : > { %v997_v6 = vpop.xlane.xlu0 %996 }
 0x29f   : > { %v998_v7 = vrot.slane %v997_v6, 4 }
 0x2a1   : > { %v999_v22 = vadd.f32 %v998_v7, %v997_v6 }
 0x2a3   : > { %v1000_v35 = vrot.slane %v999_v22, 2 }
 0x2a5   : > { %v1001_v31 = vadd.f32 %v1000_v35, %v999_v22 }
 0x2a7   : > { %v1002_v28 = vrot.slane %v1001_v31, 1 }
 0x2a9   : > { %v1003_v36 = vadd.f32 %v1002_v28, %v1001_v31 }
 0x2ab   : > { %1167 = vpush %v1003_v36 }
 0x2dc   : > { %s1168_s1 = spop %1167 }
 0x2dd   : > { %v1005_v56 = vstv %s1168_s1 }
 0x2de   : > { %v1006_v8 = vmul.f32 -0.5, %v1005_v56 }
 0x2e0   : > { %1008 = vst.msk [vmem:[%s236_s29] sm:$0x1] %vm1007_vm8, %v1006_v8 }
 0x2e1 PF: > { %s18_s26 = sadd.s32 1, %s1249_s26   ;;  %s1679_s24 = smov %s1245_s25 }
 0x2e2   : > { %p15_p13 = scmp.ge.s32.totalorder %s18_s26, 4   ;;  %s1680_s25 = smov %s1682_s0 }
 0x2e4   :  { %17 = sbr.rel (!%p15_p13) target bundleno = 4 (0x4), region = 77 }

</bundles_post_ra>
